<compile_context>
chip_gen: v5e
topology: v5e:2x2
jax: 0.10.0
libtpu: 0.0.40
codegen_flags: <defaults>
</compile_context>

<pallas_src>
import functools

import jax
import jax.numpy as jnp
from jax.experimental import pallas as pl
from jax.experimental.pallas import tpu as pltpu


def _cdiv(a, b):
    return -(-a // b)


def _round_up(a, m):
    return ((a + m - 1) // m) * m


def _linear_kernel(w_ref, b_ref, xt_ref, o_ref):
    # w_ref : (in_f,) f32 in SMEM   (flattened row of W, out_f == 1)
    # b_ref : (1,)    f32 in SMEM
    # xt_ref: (in_f, R, L) f32 in VMEM  -- dense (sublane x lane) batch tiles
    # o_ref : (R, L)       f32 in VMEM  -- fully lane/sublane-dense output
    acc = xt_ref[0] * w_ref[0]
    for k in range(1, xt_ref.shape[0]):   # in_f is tiny & static -> unrolled VPU FMAs
        acc = acc + xt_ref[k] * w_ref[k]
    o_ref[...] = acc + b_ref[0]


@functools.partial(
    jax.jit,
    static_argnames=("lane_cols", "rows_per_step", "small_n_threshold", "force_pallas"),
)
def linear_forward(x, w, b, *, lane_cols=1024, rows_per_step=256,
                   small_n_threshold=2048, force_pallas=False):
    """x: (N, in_f) f32, w: (1, in_f) f32, b: (1,) f32 -> (N, 1) f32."""
    n, in_f = x.shape
    out_f, w_in_f = w.shape
    assert out_f == 1 and w_in_f == in_f and b.shape == (out_f,)

    # Small-batch fast path: pallas_call launch + layout plumbing dominate.
    if n < small_n_threshold and not force_pallas:
        return x @ w.T + b

    # Guard the tuning knobs so BlockSpec dims respect the (8, 128) rule.
    lane = max(128, _round_up(lane_cols, 128))
    r_max = max(8, _round_up(rows_per_step, 8))

    # Dense repacking of the batch axis: pad N up to a multiple of `lane`
    # columns only (waste < lane + 8*num_tiles columns, never a whole tile).
    n_cols = _round_up(n, lane)
    rows_total = n_cols // lane
    num_tiles = _cdiv(rows_total, r_max)
    # Keep >=2 (ideally 4) parallel grid steps so both v7x TensorCores work.
    if rows_total >= 32:
        num_tiles = max(num_tiles, 4)
    elif rows_total >= 16:
        num_tiles = max(num_tiles, 2)
    if num_tiles == 1:
        rows_block = rows_total          # block == full extent, always legal
    else:
        rows_block = _round_up(_cdiv(rows_total, num_tiles), 8)
    rows_pad = rows_block * num_tiles
    n_pad = rows_pad * lane

    # Feature-major, lane-dense layout: (in_f, rows_pad, lane).
    # Under jit the transpose + pad fuse into a single pass over x.
    xt = jnp.pad(x.T, ((0, 0), (0, n_pad - n))).reshape(in_f, rows_pad, lane)

    # Explicit VMEM budget: double-buffered input + output tiles plus slack.
    itemsize = jnp.dtype(x.dtype).itemsize
    in_tile_bytes = in_f * rows_block * lane * itemsize
    out_tile_bytes = rows_block * lane * itemsize
    vmem_bytes = int(max(2 * (in_tile_bytes + out_tile_bytes) + (4 << 20), 16 << 20))

    yt = pl.pallas_call(
        _linear_kernel,
        out_shape=jax.ShapeDtypeStruct((rows_pad, lane), x.dtype),
        grid_spec=pltpu.PrefetchScalarGridSpec(
            num_scalar_prefetch=0,
            grid=(num_tiles,),
            in_specs=[
                # weights / bias: whole (tiny) arrays in SMEM, read as scalars.
                pl.BlockSpec(memory_space=pltpu.MemorySpace.SMEM),
                pl.BlockSpec(memory_space=pltpu.MemorySpace.SMEM),
                # activations: (in_f, R, L) dense block, rows tiled on the grid.
                pl.BlockSpec((in_f, rows_block, lane), lambda i: (0, i, 0)),
            ],
            out_specs=pl.BlockSpec((rows_block, lane), lambda i: (i, 0)),
        ),
        compiler_params=pltpu.CompilerParams(
            # Batch tiles are independent -> shard across both TCs on v7x.
            dimension_semantics=("parallel",),
            vmem_limit_bytes=vmem_bytes,
        ),
    )(w.reshape(in_f), b, xt)

    # Padded tail columns hold `b`; the [:n] slice below drops them.
    return yt.reshape(n_pad)[:n].reshape(n, out_f)


if __name__ == "__main__":
    key = jax.random.PRNGKey(0)
    k_x, k_w, k_b, k_x2, k_x3 = jax.random.split(key, 5)

    # Shapes implied by the module: Linear(2, 1).  Small batch of 8.
    N, IN_F, OUT_F = 8, 2, 1

    # Deterministic init mimicking torch.nn.Linear default: U(-1/sqrt(in), 1/sqrt(in))
    bound = 1.0 / jnp.sqrt(jnp.float32(IN_F))
    w = jax.random.uniform(k_w, (OUT_F, IN_F), jnp.float32, -bound, bound)
    b = jax.random.uniform(k_b, (OUT_F,), jnp.float32, -bound, bound)

    x = jax.random.normal(k_x, (N, IN_F), jnp.float32)
    y_ref = x @ w.T + b

    # Small batch, forced through the Pallas kernel (exercises the kernel).
    y = linear_forward(x, w, b, force_pallas=True)
    jax.block_until_ready(y)
    assert y.shape == (N, OUT_F)
    assert jnp.allclose(y, y_ref, atol=1e-5, rtol=1e-5)

    # Same small batch via the default XLA fast path.
    y_fast = linear_forward(x, w, b)
    jax.block_until_ready(y_fast)
    assert jnp.allclose(y_fast, y_ref, atol=1e-5, rtol=1e-5)

    # Mid-size batch: single-tile Pallas path, rows not a multiple of 8.
    x_mid = jax.random.normal(k_x2, (3000, IN_F), jnp.float32)
    y_mid = linear_forward(x_mid, w, b)
    jax.block_until_ready(y_mid)
    assert y_mid.shape == (3000, OUT_F)
    assert jnp.allclose(y_mid, x_mid @ w.T + b, atol=1e-5, rtol=1e-5)

    # Larger non-aligned batch: padding + multi-step "parallel" grid path.
    x_big = jax.random.normal(k_x3, (70000, IN_F), jnp.float32)
    y_big = linear_forward(x_big, w, b)
    jax.block_until_ready(y_big)
    assert y_big.shape == (70000, OUT_F)
    assert jnp.allclose(y_big, x_big @ w.T + b, atol=1e-5, rtol=1e-5)

    print("KERNEL_OK")
</pallas_src>

<mosaic_0001>
module attributes {stable_mosaic.version = 11 : i64} {
  func.func @_linear_kernel(%arg0: i32, %arg1: memref<2xf32, #tpu.memory_space<smem>>, %arg2: memref<1xf32, #tpu.memory_space<smem>>, %arg3: memref<2x1x1024xf32, #tpu.memory_space<vmem>>, %arg4: memref<1x1024xf32, #tpu.memory_space<vmem>>) attributes {dimension_semantics = [#tpu.dimension_semantics<parallel>], iteration_bounds = array<i64: 1>, scalar_prefetch = 0 : i64, scratch_operands = 0 : i64, tpu.core_type = #tpu.core_type<tc>, window_params = [{transform_indices = @transform_0, window_bounds = array<i64: 2>}, {transform_indices = @transform_1, window_bounds = array<i64: 1>}, {transform_indices = @transform_2, window_bounds = array<i64: 2, 1, 1024>}, {transform_indices = @transform_3, window_bounds = array<i64: 1, 1024>}]} {
    %c0 = arith.constant 0 : index
    %c0_0 = arith.constant 0 : index
    %c0_1 = arith.constant 0 : index
    %0 = vector.load %arg3[%c0, %c0_0, %c0_1] : memref<2x1x1024xf32, #tpu.memory_space<vmem>>, vector<1x1x1024xf32>
    %1 = vector.shape_cast %0 : vector<1x1x1024xf32> to vector<1x1024xf32>
    %c0_2 = arith.constant 0 : index
    %2 = memref.load %arg1[%c0_2] : memref<2xf32, #tpu.memory_space<smem>>
    %3 = vector.broadcast %2 : f32 to vector<1x1024xf32>
    %4 = arith.mulf %1, %3 : vector<1x1024xf32>
    %c1 = arith.constant 1 : index
    %c0_3 = arith.constant 0 : index
    %c0_4 = arith.constant 0 : index
    %5 = vector.load %arg3[%c1, %c0_3, %c0_4] : memref<2x1x1024xf32, #tpu.memory_space<vmem>>, vector<1x1x1024xf32>
    %6 = vector.shape_cast %5 : vector<1x1x1024xf32> to vector<1x1024xf32>
    %c1_5 = arith.constant 1 : index
    %7 = memref.load %arg1[%c1_5] : memref<2xf32, #tpu.memory_space<smem>>
    %8 = vector.broadcast %7 : f32 to vector<1x1024xf32>
    %9 = arith.mulf %6, %8 : vector<1x1024xf32>
    %10 = arith.addf %4, %9 : vector<1x1024xf32>
    %c0_6 = arith.constant 0 : index
    %11 = memref.load %arg2[%c0_6] : memref<1xf32, #tpu.memory_space<smem>>
    %12 = vector.broadcast %11 : f32 to vector<1x1024xf32>
    %13 = arith.addf %10, %12 : vector<1x1024xf32>
    %c0_7 = arith.constant 0 : index
    %c0_8 = arith.constant 0 : index
    %14 = vector.load %arg4[%c0_7, %c0_8] : memref<1x1024xf32, #tpu.memory_space<vmem>>, vector<1x1024xf32>
    tpu.vector_store %arg4[%c0_7, %c0_8], %13 {strides = array<i32>} : memref<1x1024xf32, #tpu.memory_space<vmem>>, vector<1x1024xf32>,
    return
  }
  func.func @transform_0(%arg0: i32) -> i32 {
    %c0_i32 = arith.constant 0 : i32
    %c0_i32_0 = arith.constant 0 : i32
    return %c0_i32 : i32
  }
  func.func @transform_1(%arg0: i32) -> i32 {
    %c0_i32 = arith.constant 0 : i32
    %c0_i32_0 = arith.constant 0 : i32
    return %c0_i32 : i32
  }
  func.func @transform_2(%arg0: i32) -> (i32, i32, i32) {
    %c0_i32 = arith.constant 0 : i32
    %c0_i32_0 = arith.constant 0 : i32
    %c0_i32_1 = arith.constant 0 : i32
    return %c0_i32, %arg0, %c0_i32_0 : i32, i32, i32
  }
  func.func @transform_3(%arg0: i32) -> (i32, i32) {
    %c0_i32 = arith.constant 0 : i32
    %c0_i32_0 = arith.constant 0 : i32
    return %arg0, %c0_i32 : i32, i32
  }
}

</mosaic_0001>

<bundles_post_ra>
// kernel: linear_forward.1
= control target key start
LH: loop header
LB: loop body
LE: loop exit
PB: predicated region body
PF: predicated region fallthrough
CT: control target
= control target key end

     0   :  { %9 = vsyncpa [#allocation4], 0  ;;  %s64_s15 = smov [#allocation3]   ;;  %s100_s0 = inlined_call_operand.vmem [shape: f32[2], index: 0, kind: input, shape index: {}]   ;;  %s101_s1 = inlined_call_operand.<no memory space> [shape: f32[1], index: 1, kind: input, shape index: {}]   ;;  %s102_s2 = inlined_call_operand.vmem [shape: f32[2,1,1024], index: 2, kind: input, shape index: {}]   ;;  %s103_s3 = inlined_call_operand.vmem [shape: f32[1,1024], index: 3, kind: output, shape index: {}]  }
   0x1   :  { %s15_s14 = sshll.u32 %s100_s0, 4  ;;  %s16_s14 = int_to_ptr.vmem [resolvable:$true] %s15_s14 }
   0x2   :  { %18 = dma.vmem_to_smem %s16_s14, 16, %s64_s15, [#allocation4]  }
   0x3   :  { %62 = dma.done.wait [#allocation4], 16  }
   0x4   :  { %63 = vsyncadd [#allocation4], 4294967280 }
   0x5   :  { %27 = sfence }
   0x6   :  { %s29_s16 = sld [smem:[#allocation3]]  ;;  %v28_v0 = vld [vmem:[%s102_s2] sm:$0xff]  ;;  %v47_v1 = vld [vmem:[%s102_s2 + $0x8] sm:$0xff]  ;;  %v39_v6 = vstv %s101_s1 }
   0x7   :  { %s48_s17 = sld [smem:[#allocation3 + $0x1]] }
   0xc   :  { %v30_v2 = vstv %s29_s16 }
   0xd   :  { %v31_v3 = vmul.f32 %v30_v2, %v28_v0  ;;  %v35_v4 = vstv %s48_s17 }
   0xe   :  { %v36_v5 = vmul.f32 %v47_v1, %v35_v4 }
  0x10   :  { %v37_v7 = vadd.f32 %v36_v5, %v31_v3 }
  0x12   :  { %v40_v8 = vadd.f32 %v39_v6, %v37_v7 }
  0x14   :  { %41 = vst [vmem:[%s103_s3] sm:$0xff] %v40_v8 }
  0x15   :  { %46 = vsyncpa [#allocation4], 1 }

</bundles_post_ra>
